<compile_context>
chip_gen: v7x
topology: tpu7x:2x2x1
jax: 0.10.0
libtpu: 0.0.40
codegen_flags: <defaults>
</compile_context>

<pallas_src>
import functools

import jax
import jax.numpy as jnp
from jax.experimental import pallas as pl
from jax.experimental.pallas import tpu as pltpu

BN_EPS = 1e-5
# TODO(synk): use 256-wide N padding/tiles on v6e/v7x (2x256^2 MXU) once real H/out reach
# those widths; at the toy 64/16 sizes that only multiplies zero-FLOPs, so keep 128.
LANE = 128


def _round_up(n, m):
    return ((n + m - 1) // m) * m


def _mlp_bn_kernel(x_ref, w1_ref, gamma_ref, beta_ref, w2_ref, b2_ref, o_ref):
    # fc1. The fc1 bias is omitted: under training-mode BatchNorm,
    # (h + b1) - mean(h + b1) == h - mean(h), so it cancels exactly.
    # Matmul operands in the weight dtype (bf16 on the fast path), f32 accumulation.
    h = jnp.dot(x_ref[...].astype(w1_ref.dtype), w1_ref[...],
                preferred_element_type=jnp.float32)                   # [B, Hp] f32

    # BatchNorm1d, training-mode batch statistics (biased variance), centered two-pass
    # form (robust to catastrophic cancellation vs E[h^2]-E[h]^2 when |mean| >> std).
    inv_b = 1.0 / h.shape[0]
    mean = jnp.sum(h, axis=0, keepdims=True) * inv_b                  # [1, Hp]
    hc = h - mean
    var = jnp.sum(hc * hc, axis=0, keepdims=True) * inv_b             # [1, Hp]
    # TODO(synk): torch BatchNorm1d(training) also updates running_mean/running_var;
    # if those are needed for eval, emit mean/var as extra outputs for the caller.
    # TODO(synk): at large B, compute both column sums with one MXU matmul
    # (ones[1,B] @ concat([h, hc*hc])) instead of XLU cross-sublane reductions.

    # Fused BN affine + ReLU: y = max(hc * scale + beta, 0). rsqrt goes to the EUP slot.
    scale = gamma_ref[...] * jax.lax.rsqrt(var + BN_EPS)              # [1, Hp]
    h = jnp.maximum(hc * scale + beta_ref[...], 0.0)

    # fc2 (output lane dim padded to a multiple of 128 -> unmasked vector stores)
    out = jnp.dot(h.astype(w2_ref.dtype), w2_ref[...],
                  preferred_element_type=jnp.float32) + b2_ref[...]
    o_ref[...] = out.astype(o_ref.dtype)


def prepare_params(w1, b1, gamma, beta, w2, b2, *, matmul_dtype=jnp.bfloat16):
    """Pad/cast parameters ONCE (hoisted out of the per-call hot path).

    b1 is accepted for interface parity with the torch module but is not used:
    it cancels exactly under training-mode BatchNorm.

    Padding is mathematically exact: padded hidden columns of w1 are zero (so the padded
    hidden activations are zero and BN/ReLU keep them zero since gamma/beta pads are zero),
    and padded fc2 rows/cols plus b2 pads are zero, so padded output lanes are exactly zero.
    """
    del b1  # exact cancellation under BatchNorm (training mode)
    in_size, H = w1.shape
    out_size = w2.shape[1]
    Hp = _round_up(H, LANE)
    Np = _round_up(out_size, LANE)

    w1p = jnp.zeros((in_size, Hp), matmul_dtype).at[:, :H].set(w1.astype(matmul_dtype))
    w2p = jnp.zeros((Hp, Np), matmul_dtype).at[:H, :out_size].set(w2.astype(matmul_dtype))
    gammap = jnp.zeros((1, Hp), jnp.float32).at[:, :H].set(gamma.astype(jnp.float32))
    betap = jnp.zeros((1, Hp), jnp.float32).at[:, :H].set(beta.astype(jnp.float32))
    b2p = jnp.zeros((1, Np), jnp.float32).at[:, :out_size].set(b2.astype(jnp.float32))
    return {"w1p": w1p, "gammap": gammap, "betap": betap, "w2p": w2p, "b2p": b2p,
            "out_size": out_size}


def mlp_bn_forward(x, w1p, gammap, betap, w2p, b2p):
    """Forward of Linear -> BatchNorm1d(training) -> ReLU -> Linear on padded params.

    Returns the lane-padded [B, Np] output slab (Np = round_up(out_size, 128)). Padded
    lanes are exactly zero; slice [:, :out_size] in the consumer if a dense view is needed
    (kept out of the hot path on purpose -- the slice is a separate XLA copy per call).

    NOTE: at tiny B the call is launch-overhead bound; the biggest end-to-end win is
    batching more rows per call (BN stats are then over that larger batch, same as torch).
    """
    B, in_size = x.shape
    Hp = w1p.shape[1]
    Np = w2p.shape[1]
    itemsize = jnp.dtype(w1p.dtype).itemsize

    # Size the scoped-VMEM limit from the actual resident footprint (double-buffered I/O
    # + f32 hidden activations + bf16 matmul-operand copies), with 2x headroom.
    # TODO(synk): v7x has 64 MiB physical VMEM/TC (vs 128 MiB on v5e/v6e) -> the fully
    # resident single-block design caps at roughly ~40K rows there; beyond that, tile B
    # with a grid, restructure BN into a two-pass sum/sumsq accumulation over an
    # 'arbitrary' B axis, and mark an independent axis 'parallel' so v7x's 2nd TC is used.
    vmem_bytes = (2 * (B * in_size * 4 + w1p.size * itemsize + w2p.size * itemsize
                       + (gammap.size + betap.size + b2p.size) * 4 + B * Np * 4)
                  + 3 * B * Hp * 4
                  + B * (in_size + Hp) * itemsize)
    vmem_limit = int(min(max(2 * vmem_bytes, 16 << 20), 64 << 20))

    flops = 2 * B * (in_size * Hp + Hp * Np)
    bytes_accessed = (B * in_size * 4 + w1p.size * itemsize + w2p.size * itemsize
                      + (2 * Hp + Np) * 4 + B * Np * 4)

    vmem = pl.BlockSpec(memory_space=pltpu.MemorySpace.VMEM)
    return pl.pallas_call(
        _mlp_bn_kernel,
        out_shape=jax.ShapeDtypeStruct((B, Np), jnp.float32),
        in_specs=[vmem] * 6,
        out_specs=vmem,
        compiler_params=pltpu.CompilerParams(vmem_limit_bytes=vmem_limit),
        cost_estimate=pl.CostEstimate(flops=flops, transcendentals=Hp,
                                      bytes_accessed=bytes_accessed),
    )(x, w1p, gammap, betap, w2p, b2p)


def init_params(key, input_size, hidden_size, output_size):
    """Deterministic init matching torch nn.Linear default (U(-1/sqrt(fan_in), ...))
    and BatchNorm1d default (gamma=1, beta=0)."""
    k1, k2, k3, k4 = jax.random.split(key, 4)
    bound1 = 1.0 / (input_size ** 0.5)
    bound2 = 1.0 / (hidden_size ** 0.5)
    w1 = jax.random.uniform(k1, (input_size, hidden_size), jnp.float32, -bound1, bound1)
    b1 = jax.random.uniform(k2, (hidden_size,), jnp.float32, -bound1, bound1)
    gamma = jnp.ones((hidden_size,), jnp.float32)
    beta = jnp.zeros((hidden_size,), jnp.float32)
    w2 = jax.random.uniform(k3, (hidden_size, output_size), jnp.float32, -bound2, bound2)
    b2 = jax.random.uniform(k4, (output_size,), jnp.float32, -bound2, bound2)
    return w1, b1, gamma, beta, w2, b2


if __name__ == "__main__":
    input_size, hidden_size, output_size = 32, 64, 16
    batch = 8

    key = jax.random.PRNGKey(0)
    kx, kp = jax.random.split(key)
    x = jax.random.normal(kx, (batch, input_size), jnp.float32)
    w1, b1, gamma, beta, w2, b2 = init_params(kp, input_size, hidden_size, output_size)

    # mirror of the torch `print(x.shape)` after fc1 (shape is static here)
    print((batch, hidden_size))

    # pure-JAX f32 reference (torch semantics: fc1 bias included, two-pass BN)
    h = x @ w1 + b1
    mu = h.mean(0, keepdims=True)
    var = ((h - mu) ** 2).mean(0, keepdims=True)
    hn = jnp.maximum((h - mu) / jnp.sqrt(var + BN_EPS) * gamma + beta, 0.0)
    ref = hn @ w2 + b2

    fwd = jax.jit(mlp_bn_forward)
    Np = _round_up(output_size, LANE)

    # 1) exact-math path (f32 matmuls): validates kernel logic (b1 cancellation, centered
    #    batch stats, fused scale/shift, lane padding) to tight tolerance.
    p32 = prepare_params(w1, b1, gamma, beta, w2, b2, matmul_dtype=jnp.float32)
    out_f32 = fwd(x, p32["w1p"], p32["gammap"], p32["betap"], p32["w2p"], p32["b2p"])
    out_f32 = jax.block_until_ready(out_f32)
    assert out_f32.shape == (batch, Np)
    assert jnp.allclose(out_f32[:, :output_size], ref, atol=1e-3, rtol=1e-3)
    assert jnp.allclose(out_f32[:, output_size:], 0.0)   # padded lanes are exactly zero

    # 2) default fast path (bf16 MXU operands, f32 accumulation + f32 BN/ReLU);
    #    padded params prepared ONCE and reused across calls.
    pbf = prepare_params(w1, b1, gamma, beta, w2, b2)
    out = fwd(x, pbf["w1p"], pbf["gammap"], pbf["betap"], pbf["w2p"], pbf["b2p"])
    out = jax.block_until_ready(out)
    assert out.shape == (batch, Np)
    assert jnp.allclose(out[:, :output_size], ref, atol=1e-1, rtol=1e-1)

    print("KERNEL_OK")
</pallas_src>

<mosaic_0001>
module attributes {stable_mosaic.version = 11 : i64} {
  func.func @_mlp_bn_kernel(%arg0: memref<8x32xf32, #tpu.memory_space<vmem>>, %arg1: memref<32x128xf32, #tpu.memory_space<vmem>>, %arg2: memref<1x128xf32, #tpu.memory_space<vmem>>, %arg3: memref<1x128xf32, #tpu.memory_space<vmem>>, %arg4: memref<128x128xf32, #tpu.memory_space<vmem>>, %arg5: memref<1x128xf32, #tpu.memory_space<vmem>>, %arg6: memref<8x128xf32, #tpu.memory_space<vmem>>) attributes {dimension_semantics = [], scalar_prefetch = 0 : i64, scratch_operands = 0 : i64, tpu.core_type = #tpu.core_type<tc>} {
    %c0 = arith.constant 0 : index
    %c0_0 = arith.constant 0 : index
    %0 = vector.load %arg0[%c0, %c0_0] : memref<8x32xf32, #tpu.memory_space<vmem>>, vector<8x32xf32>
    %c0_1 = arith.constant 0 : index
    %c0_2 = arith.constant 0 : index
    %1 = vector.load %arg1[%c0_1, %c0_2] : memref<32x128xf32, #tpu.memory_space<vmem>>, vector<32x128xf32>
    %cst = arith.constant dense<0.000000e+00> : vector<8x128xf32>
    %2 = tpu.matmul %0, %1, %cst {dimension_numbers = #tpu.dot_dimension_numbers<[1], [0], [0], [1], [0, 0, 1, 1], [], []>} : vector<8x32xf32>, vector<32x128xf32>, vector<8x128xf32> -> vector<8x128xf32>
    %cst_3 = arith.constant dense<0.000000e+00> : vector<128xf32>
    %3 = vector.multi_reduction <add>, %2, %cst_3 [0] : vector<8x128xf32> to vector<128xf32>
    %4 = vector.shape_cast %3 : vector<128xf32> to vector<1x128xf32>
    %cst_4 = arith.constant 1.250000e-01 : f32
    %5 = vector.broadcast %cst_4 : f32 to vector<1x128xf32>
    %6 = arith.mulf %4, %5 : vector<1x128xf32>
    %7 = vector.broadcast %6 : vector<1x128xf32> to vector<8x128xf32>
    %8 = arith.subf %2, %7 : vector<8x128xf32>
    %9 = arith.mulf %8, %8 : vector<8x128xf32>
    %cst_5 = arith.constant dense<0.000000e+00> : vector<128xf32>
    %10 = vector.multi_reduction <add>, %9, %cst_5 [0] : vector<8x128xf32> to vector<128xf32>
    %11 = vector.shape_cast %10 : vector<128xf32> to vector<1x128xf32>
    %cst_6 = arith.constant 1.250000e-01 : f32
    %12 = vector.broadcast %cst_6 : f32 to vector<1x128xf32>
    %13 = arith.mulf %11, %12 : vector<1x128xf32>
    %c0_7 = arith.constant 0 : index
    %c0_8 = arith.constant 0 : index
    %14 = vector.load %arg2[%c0_7, %c0_8] : memref<1x128xf32, #tpu.memory_space<vmem>>, vector<1x128xf32>
    %cst_9 = arith.constant 9.99999974E-6 : f32
    %15 = vector.broadcast %cst_9 : f32 to vector<1x128xf32>
    %16 = arith.addf %13, %15 : vector<1x128xf32>
    %17 = math.rsqrt %16 : vector<1x128xf32>
    %18 = arith.mulf %14, %17 : vector<1x128xf32>
    %19 = vector.broadcast %18 : vector<1x128xf32> to vector<8x128xf32>
    %20 = arith.mulf %8, %19 : vector<8x128xf32>
    %c0_10 = arith.constant 0 : index
    %c0_11 = arith.constant 0 : index
    %21 = vector.load %arg3[%c0_10, %c0_11] : memref<1x128xf32, #tpu.memory_space<vmem>>, vector<1x128xf32>
    %22 = vector.broadcast %21 : vector<1x128xf32> to vector<8x128xf32>
    %23 = arith.addf %20, %22 : vector<8x128xf32>
    %cst_12 = arith.constant 0.000000e+00 : f32
    %24 = vector.broadcast %cst_12 : f32 to vector<8x128xf32>
    %25 = arith.maximumf %23, %24 : vector<8x128xf32>
    %c0_13 = arith.constant 0 : index
    %c0_14 = arith.constant 0 : index
    %26 = vector.load %arg4[%c0_13, %c0_14] : memref<128x128xf32, #tpu.memory_space<vmem>>, vector<128x128xf32>
    %cst_15 = arith.constant dense<0.000000e+00> : vector<8x128xf32>
    %27 = tpu.matmul %25, %26, %cst_15 {dimension_numbers = #tpu.dot_dimension_numbers<[1], [0], [0], [1], [0, 0, 1, 1], [], []>} : vector<8x128xf32>, vector<128x128xf32>, vector<8x128xf32> -> vector<8x128xf32>
    %c0_16 = arith.constant 0 : index
    %c0_17 = arith.constant 0 : index
    %28 = vector.load %arg5[%c0_16, %c0_17] : memref<1x128xf32, #tpu.memory_space<vmem>>, vector<1x128xf32>
    %29 = vector.broadcast %28 : vector<1x128xf32> to vector<8x128xf32>
    %30 = arith.addf %27, %29 : vector<8x128xf32>
    %c0_18 = arith.constant 0 : index
    %c0_19 = arith.constant 0 : index
    %31 = vector.load %arg6[%c0_18, %c0_19] : memref<8x128xf32, #tpu.memory_space<vmem>>, vector<8x128xf32>
    tpu.vector_store %arg6[%c0_18, %c0_19], %30 {strides = array<i32>} : memref<8x128xf32, #tpu.memory_space<vmem>>, vector<8x128xf32>,
    return
  }
}

</mosaic_0001>

<bundles_post_ra>
// kernel: mlp_bn_forward.1
= control target key start
LH: loop header
LB: loop body
LE: loop exit
PB: predicated region body
PF: predicated region fallthrough
CT: control target
= control target key end

     0   :  { %11 = vsyncpa [#allocation3], 0  ;;  %s601_s0 = inlined_call_operand.hbm [shape: f32[8,32], index: 0, kind: input, shape index: {}]   ;;  %s602_s1 = inlined_call_operand.hbm [shape: f32[32,128], index: 1, kind: input, shape index: {}]   ;;  %s603_s2 = inlined_call_operand.vmem [shape: f32[1,128], index: 2, kind: input, shape index: {}]   ;;  %s604_s3 = inlined_call_operand.vmem [shape: f32[1,128], index: 3, kind: input, shape index: {}]   ;;  %s605_s4 = inlined_call_operand.hbm [shape: f32[128,128], index: 4, kind: input, shape index: {}]   ;;  %s606_s5 = inlined_call_operand.vmem [shape: f32[1,128], index: 5, kind: input, shape index: {}]   ;;  %s607_s6 = inlined_call_operand.hbm [shape: f32[8,128], index: 6, kind: output, shape index: {}]  }
   0x1   :  { %12 = vsyncpa [#allocation6], 0 }
   0x2   :  { %13 = vsyncpa [#allocation4], 0  ;;  %s494_s21 = smov [#allocation5]   ;;  %s400_s25 = scalar_lea.hbm %s602_s1, 512 }
   0x3   :  { %s29_s22 = sshll.u32 %s494_s21, 4  ;;  %p401_p0 = scmp.ne.s32.totalorder %s602_s1, %s400_s25  ;;  %s30_s22 = int_to_ptr.vmem [resolvable:$true] %s29_s22 }
   0x4   :  { %p404_p1 = scmp.lt.u32.totalorder %s400_s25, %s602_s1 }
   0x6   :  { %p406_p2 = pnand %p404_p1, %p401_p0 }
   0x8   :  { %409 = shalt.err (!%p406_p2)
}
   0x9   :  { %s410_s30 = scalar_lea.vmem %s30_s22, 512  ;;  %p415_p4 = scmp.lt.s32.totalorder %s30_s22, %s30_s22 }
   0xa   :  { %p411_p3 = scmp.ne.s32.totalorder %s30_s22, %s410_s30  ;;  %p416_p5 = scmp.lt.s32.totalorder %s410_s30, %s410_s30 }
   0xc   :  { %p417_p6 = por %p416_p5, %p415_p4 }
   0xe   :  { %p418_p7 = pnand %p417_p6, %p411_p3 }
  0x10   :  { %421 = shalt.err (!%p418_p7)
}
  0x11   :  { %s495_s7 = smov 128   ;;  %s496_s8 = smov 8  }
  0x12   :  { %35 = dma.hbm_to_vmem [thread:$0]  %s602_s1, 512, %s30_s22, [#allocation6], %s495_s7, %s495_s7, %s496_s8  }
  0x13   :  { %s497_s11 = smov [#allocation2]   ;;  %s498_s13 = smov [#allocation7]  }
  0x14   :  { %s20_s12 = sshll.u32 %s497_s11, 4  ;;  %s45_s14 = sshll.u32 %s498_s13, 4  ;;  %s21_s12 = int_to_ptr.vmem [resolvable:$true] %s20_s12  ;;  %s46_s14 = int_to_ptr.vmem [resolvable:$true] %s45_s14 }
  0x15   :  { %s422_s17 = scalar_lea.hbm %s601_s0, 128 }
  0x16   :  { %p423_p8 = scmp.ne.s32.totalorder %s601_s0, %s422_s17  ;;  %p426_p9 = scmp.lt.u32.totalorder %s422_s17, %s601_s0 }
  0x18   :  { %p428_p10 = pnand %p426_p9, %p423_p8 }
  0x1a   :  { %431 = shalt.err (!%p428_p10)
}
  0x1b   :  { %s432_s1 = scalar_lea.vmem %s21_s12, 128  ;;  %p437_p12 = scmp.lt.s32.totalorder %s21_s12, %s21_s12 }
  0x1c   :  { %p433_p11 = scmp.ne.s32.totalorder %s21_s12, %s432_s1  ;;  %p438_p13 = scmp.lt.s32.totalorder %s432_s1, %s432_s1 }
  0x1e   :  { %p439_p0 = por %p438_p13, %p437_p12 }
  0x20   :  { %p440_p1 = pnand %p439_p0, %p433_p11 }
  0x22   :  { %443 = shalt.err (!%p440_p1)
}
  0x23   :  { %23 = dma.hbm_to_vmem [thread:$0]  %s601_s0, 128, %s21_s12, [#allocation3]  }
  0x24   :  { %s444_s26 = scalar_lea.hbm %s605_s4, 2048 }
  0x25   :  { %p445_p2 = scmp.ne.s32.totalorder %s605_s4, %s444_s26  ;;  %p448_p3 = scmp.lt.u32.totalorder %s444_s26, %s605_s4 }
  0x27   :  { %p450_p4 = pnand %p448_p3, %p445_p2 }
  0x29   :  { %453 = shalt.err (!%p450_p4)
}
  0x2a   :  { %s454_s9 = scalar_lea.vmem %s46_s14, 2048  ;;  %p459_p6 = scmp.lt.s32.totalorder %s46_s14, %s46_s14 }
  0x2b   :  { %p455_p5 = scmp.ne.s32.totalorder %s46_s14, %s454_s9  ;;  %p460_p7 = scmp.lt.s32.totalorder %s454_s9, %s454_s9 }
  0x2d   :  { %p461_p8 = por %p460_p7, %p459_p6 }
  0x2f   :  { %p462_p9 = pnand %p461_p8, %p455_p5 }
  0x31   :  { %465 = shalt.err (!%p462_p9)
}
  0x32   :  { %51 = dma.hbm_to_vmem [thread:$0]  %s605_s4, 2048, %s46_s14, [#allocation6], %s495_s7, %s495_s7, %s496_s8  }
  0x33   :  { %488 = dma.done.wait [#allocation3], 128  }
  0x34   :  { %489 = vsyncadd [#allocation3], 4294967168 }
  0x35   :  { %490 = dma.done.wait [#allocation6], 2560  }
  0x36   :  { %491 = vsyncadd [#allocation6], 4294964736  ;;  %v499_v0 = vmov 0.0|0.0   ;;  %vm500_vm0 = vmmov 0   ;;  %v501_v1 = vmov 0.0   ;;  %v64_v2 = vld [vmem:[#allocation5] sm:$0xff]  ;;  %v163_v52 = vlaneseq }
  0x37   :  { %359 = vmatprep.subr.bf16.mxu0 %v499_v0  ;;  %321 = vmatprep.mubr.msk.f32.mxu0 %vm500_vm0, %v501_v1  ;;  %v65_v3 = vld [vmem:[#allocation5 + $0x8] sm:$0xff]  ;;  %v66_v4 = vld [vmem:[#allocation5 + $0x10] sm:$0xff]  ;;  %v67_v6 = vld [vmem:[#allocation5 + $0x18] sm:$0xff]  ;;  %vm68_vm1 = vcmask 261120   ;;  %s502_s14 = smov [#allocation8]  }
  0x38   :  { %365 = vmatprep.subr.bf16.mxu1 %v499_v0  ;;  %356 = vmatprep.mubr.msk.f32.mxu1 %vm500_vm0, %v501_v1  ;;  %v360_v5 = vpack.c.bf16 %v65_v3, %v64_v2  ;;  %v363_v7 = vpack.c.bf16 %v67_v6, %v66_v4  ;;  %v63_v8 = vld [vmem:[#allocation2] sm:$0xff]  ;;  %v178_v9 = vld [vmem:[#allocation7] sm:$0xff]  ;;  %v179_v10 = vld [vmem:[#allocation7 + $0x8] sm:$0xff]  ;;  %v164_v53 = vshrl.u32 %v163_v52, 7  ;;  %s278_s15 = sshll.u32 %s502_s14, 4  ;;  %s279_s15 = int_to_ptr.vmem [resolvable:$true] %s278_s15 }
  0x39   :  { %v366_v11 = vpack.c.bf16 %v179_v10, %v178_v9  ;;  %v180_v12 = vld [vmem:[#allocation7 + $0x10] sm:$0xff]  ;;  %v181_v13 = vld [vmem:[#allocation7 + $0x18] sm:$0xff]  ;;  %v182_v15 = vld [vmem:[#allocation7 + $0x20] sm:$0xff]  ;;  %p471_p11 = scmp.lt.s32.totalorder %s279_s15, %s279_s15 }
  0x3a   :  { %361 = vmatpush3.bf16.msra.mxu0 %v360_v5  ;;  %v369_v14 = vpack.c.bf16 %v181_v13, %v180_v12  ;;  %v183_v16 = vld [vmem:[#allocation7 + $0x28] sm:$0xff]  ;;  %v184_v18 = vld [vmem:[#allocation7 + $0x30] sm:$0xff]  ;;  %v185_v19 = vld [vmem:[#allocation7 + $0x38] sm:$0xff]  ;;  %v165_v55 = vsub.s32 0, %v164_v53 }
  0x3b   :  { %362 = vmatprep.subr.bf16.mxu0 %v499_v0  ;;  %367 = vmatpush3.bf16.msra.mxu1 %v366_v11  ;;  %v372_v17 = vpack.c.bf16 %v183_v16, %v182_v15  ;;  %v375_v20 = vpack.c.bf16 %v185_v19, %v184_v18  ;;  %v186_v21 = vld [vmem:[#allocation7 + $0x40] sm:$0xff]  ;;  %v187_v22 = vld [vmem:[#allocation7 + $0x48] sm:$0xff]  ;;  %v188_v24 = vld [vmem:[#allocation7 + $0x50] sm:$0xff] }
  0x3c   :  { %368 = vmatprep.subr.bf16.mxu1 %v499_v0  ;;  %v378_v23 = vpack.c.bf16 %v187_v22, %v186_v21  ;;  %v189_v25 = vld [vmem:[#allocation7 + $0x58] sm:$0xff]  ;;  %v190_v27 = vld [vmem:[#allocation7 + $0x60] sm:$0xff]  ;;  %v191_v28 = vld [vmem:[#allocation7 + $0x68] sm:$0xff] }
  0x3d   :  { %v381_v26 = vpack.c.bf16 %v189_v25, %v188_v24  ;;  %v384_v29 = vpack.c.bf16 %v191_v28, %v190_v27  ;;  %v192_v30 = vld [vmem:[#allocation7 + $0x70] sm:$0xff]  ;;  %v193_v31 = vld [vmem:[#allocation7 + $0x78] sm:$0xff] }
  0x3e   :  { %364 = vmatpush3.bf16.msra.mxu0 %v363_v7  ;;  %v387_v32 = vpack.c.bf16 %v193_v31, %v192_v30  ;;  %v158_v54 = vld [vmem:[%s603_s2] sm:$0x1]  ;;  %s466_s2 = scalar_lea.vmem %s279_s15, 128 }
  0x3f   :  { %370 = vmatpush3.bf16.msra.mxu1 %v369_v14  ;;  %v289_v59 = vld [vmem:[%s604_s3] ss:$0 sm:$0xff]  ;;  %p467_p10 = scmp.ne.s32.totalorder %s279_s15, %s466_s2  ;;  %p472_p12 = scmp.lt.s32.totalorder %s466_s2, %s466_s2 }
  0x40   :  { %371 = vmatprep.subr.bf16.mxu1 %v499_v0  ;;  %v290_v63 = vld [vmem:[%s606_s5] ss:$0 sm:$0xff] }
  0x41   :  { %322 = vmatmul.mubr.msk.f32.vlgmr.msra.gmra.mrb[0].mxu0 %vm68_vm1, %v63_v8  ;;  %p473_p13 = por %p472_p12, %p471_p11 }
  0x43   :  { %373 = vmatpush3.bf16.msra.mxu1 %v372_v17  ;;  %p474_p0 = pnand %p473_p13, %p467_p10 }
  0x44   :  { %374 = vmatprep.subr.bf16.mxu1 %v499_v0 }
  0x47   :  { %376 = vmatpush3.bf16.msra.mxu1 %v375_v20 }
  0x48   :  { %377 = vmatprep.subr.bf16.mxu1 %v499_v0 }
  0x4b   :  { %379 = vmatpush3.bf16.msra.mxu1 %v378_v23 }
  0x4c   :  { %380 = vmatprep.subr.bf16.mxu1 %v499_v0 }
  0x4f   :  { %382 = vmatpush3.bf16.msra.mxu1 %v381_v26 }
  0x50   :  { %383 = vmatprep.subr.bf16.mxu1 %v499_v0 }
  0x53   :  { %385 = vmatpush3.bf16.msra.mxu1 %v384_v29 }
  0x54   :  { %386 = vmatprep.subr.bf16.mxu1 %v499_v0 }
  0x57   :  { %388 = vmatpush3.bf16.msra.mxu1 %v387_v32 }
 0x114   :  { %v138_v33 = vpop.f32.mrb[0].mxu0 }
 0x115   :  { %v142_v34 = vrot.slane %v138_v33, 4  ;;  %v323_v35 = vpop.f32.mrb[1].mxu0 }
 0x117   :  { %v143_v36 = vadd.f32 %v142_v34, %v138_v33 }
 0x119   :  { %v144_v37 = vrot.slane %v143_v36, 2 }
 0x11b   :  { %v145_v38 = vadd.f32 %v144_v37, %v143_v36 }
 0x11d   :  { %v146_v39 = vrot.slane %v145_v38, 1 }
 0x11f   :  { %v147_v40 = vadd.f32 %v146_v39, %v145_v38 }
 0x121   :  { %v148_v41 = vmul.f32 0.125, %v147_v40 }
 0x123   :  { %v149_v42 = vsub.f32 %v138_v33, %v148_v41 }
 0x125   :  { %v150_v43 = vmul.f32 %v149_v42, %v149_v42 }
 0x127   :  { %v151_v44 = vrot.slane %v150_v43, 4 }
 0x129   :  { %v152_v45 = vadd.f32 %v151_v44, %v150_v43 }
 0x12b   :  { %v153_v46 = vrot.slane %v152_v45, 2 }
 0x12d   :  { %v154_v47 = vadd.f32 %v153_v46, %v152_v45 }
 0x12f   :  { %v155_v48 = vrot.slane %v154_v47, 1 }
 0x131   :  { %v156_v49 = vadd.f32 %v155_v48, %v154_v47 }
 0x133   :  { %v157_v50 = vmul.f32 0.125, %v156_v49 }
 0x135   :  { %v159_v51 = vadd.f32 1e-05, %v157_v50 }
 0x137   :  { %398 = vrsqrt.f32 %v159_v51 }
 0x141   :  { %v399_v56 = vpop.eup %398 }
 0x142   :  { %v161_v57 = vmul.f32 %v399_v56, %v158_v54 }
 0x144   :  { %v166_v58 = vrot.slane %v161_v57, %v165_v55 }
 0x146   :  { %v168_v60 = vmul.f32 %v166_v58, %v149_v42 }
 0x148   :  { %v176_v61 = vadd.f32 %v289_v59, %v168_v60 }
 0x14a   :  { %v177_v62 = vmax.f32 %v176_v61, 0.0 }
 0x14c   :  { %357 = vmatmul.mubr.f32.vlgmr.msra.gmra.mrb[0].mxu1 %v177_v62 }
 0x21f   :  { %v267_v0 = vpop.f32.mrb[0].mxu1 }
 0x220   :  { %v268_v1 = vadd.f32 %v290_v63, %v267_v0  ;;  %v358_v2 = vpop.f32.mrb[1].mxu1 }
 0x222   :  { %271 = vst [vmem:[#allocation8] sm:$0xff] %v268_v1 }
 0x223   :  { %477 = shalt.err (!%p474_p0)
}
 0x224   :  { %s478_s17 = scalar_lea.hbm %s607_s6, 128 }
 0x225   :  { %p479_p1 = scmp.ne.s32.totalorder %s607_s6, %s478_s17  ;;  %p482_p2 = scmp.lt.u32.totalorder %s478_s17, %s607_s6 }
 0x227   :  { %p484_p3 = pnand %p482_p2, %p479_p1 }
 0x229   :  { %487 = shalt.err (!%p484_p3)
}
 0x22a   :  { %281 = dma.vmem_to_hbm [thread:$0]  %s279_s15, 128, %s607_s6, [#allocation4]  }
 0x22b   :  { %492 = dma.done.wait [#allocation4], 128  }
 0x22c   :  { %493 = vsyncadd [#allocation4], 4294967168 }
 0x22d   :  { %285 = vsyncpa [#allocation3], 1 }
 0x22e   :  { %286 = vsyncpa [#allocation6], 1 }
 0x22f   :  { %287 = vsyncpa [#allocation4], 1 }

</bundles_post_ra>
